<compile_context>
chip_gen: v7x
topology: tpu7x:2x2x1
jax: 0.10.0
libtpu: 0.0.40
codegen_flags: <defaults>
</compile_context>

<pallas_src>
import functools
import math

import jax
import jax.numpy as jnp
from jax.experimental import pallas as pl
from jax.experimental.pallas import tpu as pltpu

FEAT = 3 * 8 * 8            # 192 — real feature dim of encodings_state / encodings_obs
FEAT_PAD = 256              # padded to a multiple of 128 lanes (unmasked vector ops)
HALF_LN_2PI = 0.5 * math.log(2.0 * math.pi)


def _measurement_kernel(up_ref, s2_ref, t_ref,
                        w1_ref, b1_ref, w2_ref, b2_ref,
                        out_ref, *, n_particles, matmul_dtype):
    """One grid step == a block of whole batches.

    up_ref  : (b_blk * P_PAD, S)      particles of these batches (row-flattened)
    s2_ref  : (b_blk, 1, FEAT_PAD)    per-batch exp(2*log_s), feature-padded with 0
    t_ref   : (b_blk, 1, FEAT_PAD)    per-batch t,             feature-padded with 0
    out_ref : (b_blk, 1, P_PAD)       max-subtracted likelihood (lane-dense last dim)
    """
    b_blk, _, feat_pad = s2_ref.shape
    rows = up_ref.shape[0]
    p_pad = rows // b_blk

    # ---- particle encoder MLP on the MXU; fp32 accumulation ----
    h = jnp.dot(up_ref[...], w1_ref[...],
                preferred_element_type=jnp.float32) + b1_ref[...]
    h = jnp.maximum(h, 0.0)                                               # ReLU (fp32)
    x = jnp.dot(h.astype(matmul_dtype), w2_ref[...],
                preferred_element_type=jnp.float32) + b2_ref[...]         # (rows, FP)

    # ---- conditional affine coupling; obs terms are per-batch, broadcast here ----
    y = x.reshape(b_blk, p_pad, feat_pad) + t_ref[...]                    # (b_blk, P, FP)

    # sum_f (y*s)^2 == sum_f y^2 * s^2 : contract on the MXU instead of an XLU
    # cross-lane reduce (padded feature lanes contribute exactly 0).
    q = jnp.einsum('bqf,bpf->bqp', s2_ref[...], y * y,
                   preferred_element_type=jnp.float32)                    # (b_blk, 1, P)

    # mask padded particle columns so they cannot win the per-batch min
    col = jax.lax.broadcasted_iota(jnp.int32, q.shape, 2)
    q = jnp.where(col < n_particles, q, jnp.float32(1e30))

    # lik - max(lik) == -0.5 * (q - min(q)); per-batch constants cancel exactly
    out_ref[...] = -0.5 * (q - jnp.min(q, axis=-1, keepdims=True))


def _pick_batches_per_block(n_batch, p_pad, target_rows):
    """Whole batches per grid step; keep >=2 grid steps when possible (v7x megacore)."""
    b = max(1, target_rows // p_pad)
    if n_batch >= 2:
        b = min(b, pl.cdiv(n_batch, 2))      # at least 2 steps along the parallel axis
    return min(b, n_batch)


def measurement_model_cglow(encodings, update_particles, params, *,
                            target_rows=4096,
                            matmul_dtype=jnp.float32,
                            vmem_limit_bytes=48 * 1024 * 1024):
    """encodings: (n_batch, FEAT); update_particles: (n_batch, n_particles, S)."""
    (w1, b1, w2, b2, wls, bls, wt, bt) = params
    n_batch, n_particles, state_dim = update_particles.shape

    enc = encodings.astype(jnp.float32)                                   # (n_batch, FEAT)

    # --- hoisted CGLOW conditioning: one dense matmul per *batch*, not per particle.
    #     exp() hoisted too; sum(log_s) cancels in the max-subtraction and is dropped.
    log_s = jnp.tanh(enc @ wls.astype(jnp.float32) + bls.astype(jnp.float32))
    t_cond = enc @ wt.astype(jnp.float32) + bt.astype(jnp.float32)
    s2 = jnp.exp(2.0 * log_s)                                             # (n_batch, FEAT)

    # --- pad feature axis 192 -> 256 with zeros (exact: padded lanes contribute 0) ---
    pad_f = FEAT_PAD - FEAT
    s2 = jnp.pad(s2, ((0, 0), (0, pad_f)))[:, None, :]                    # (n_batch, 1, FP)
    t_cond = jnp.pad(t_cond, ((0, 0), (0, pad_f)))[:, None, :]
    w1c = w1.astype(matmul_dtype)
    b1f = b1.astype(jnp.float32)
    w2c = jnp.pad(w2.astype(jnp.float32), ((0, 0), (0, pad_f))).astype(matmul_dtype)
    b2p = jnp.pad(b2.astype(jnp.float32), ((0, 0), (0, pad_f)))

    # --- particle axis padded to a lane-dense multiple of 128 (masked in-kernel) ---
    p_pad = pl.cdiv(n_particles, 128) * 128

    # --- whole batches per grid step; pad batch axis to a multiple of the block ---
    b_blk = _pick_batches_per_block(n_batch, p_pad, target_rows)
    n_batch_pad = pl.cdiv(n_batch, b_blk) * b_blk

    up = update_particles.astype(jnp.float32)
    up = jnp.pad(up, ((0, n_batch_pad - n_batch), (0, p_pad - n_particles), (0, 0)))
    s2 = jnp.pad(s2, ((0, n_batch_pad - n_batch), (0, 0), (0, 0)))
    t_cond = jnp.pad(t_cond, ((0, n_batch_pad - n_batch), (0, 0), (0, 0)))
    up_flat = up.reshape(n_batch_pad * p_pad, state_dim).astype(matmul_dtype)

    rows_blk = b_blk * p_pad
    grid = (n_batch_pad // b_blk,)

    kernel = functools.partial(_measurement_kernel,
                               n_particles=n_particles, matmul_dtype=matmul_dtype)

    out = pl.pallas_call(
        kernel,
        out_shape=jax.ShapeDtypeStruct((n_batch_pad, 1, p_pad), jnp.float32),
        grid=grid,
        in_specs=[
            pl.BlockSpec((rows_blk, state_dim), lambda b: (b, 0)),        # particles
            pl.BlockSpec((b_blk, 1, FEAT_PAD), lambda b: (b, 0, 0)),      # per-batch s^2
            pl.BlockSpec((b_blk, 1, FEAT_PAD), lambda b: (b, 0, 0)),      # per-batch t
            pl.BlockSpec(w1c.shape, lambda b: (0, 0)),
            pl.BlockSpec(b1f.shape, lambda b: (0, 0)),
            pl.BlockSpec(w2c.shape, lambda b: (0, 0)),
            pl.BlockSpec(b2p.shape, lambda b: (0, 0)),
        ],
        out_specs=pl.BlockSpec((b_blk, 1, p_pad), lambda b: (b, 0, 0)),   # lane-dense
        compiler_params=pltpu.CompilerParams(
            dimension_semantics=("parallel",),
            vmem_limit_bytes=vmem_limit_bytes,
        ),
    )(up_flat, s2, t_cond, w1c, b1f, w2c, b2p)

    return out[:n_batch, 0, :n_particles]


def _reference(encodings, update_particles, params, matmul_dtype=jnp.float32):
    """Pure-JAX reference (mirrors the torch forward with the synthesized modules)."""
    (w1, b1, w2, b2, wls, bls, wt, bt) = params
    n_batch, n_particles, state_dim = update_particles.shape
    p = update_particles.reshape(-1, state_dim).astype(jnp.float32)
    h = jnp.maximum(jnp.dot(p.astype(matmul_dtype), w1.astype(matmul_dtype),
                            preferred_element_type=jnp.float32) + b1, 0.0)
    x = jnp.dot(h.astype(matmul_dtype), w2.astype(matmul_dtype),
                preferred_element_type=jnp.float32) + b2
    obs = jnp.repeat(encodings.astype(jnp.float32)[:, None, :],
                     n_particles, axis=1).reshape(-1, FEAT)
    log_s = jnp.tanh(obs @ wls + bls)
    t = obs @ wt + bt
    z = (x + t) * jnp.exp(log_s)
    nll = (0.5 * jnp.sum(z * z, axis=-1) + FEAT * HALF_LN_2PI
           - jnp.sum(log_s, axis=-1))
    lik = (-nll).reshape(n_batch, n_particles)
    return lik - jnp.max(lik, axis=-1, keepdims=True)


def init_params(key, state_dim=4, hidden=32):
    ks = jax.random.split(key, 6)
    w1 = 0.2 * jax.random.normal(ks[0], (state_dim, hidden), jnp.float32)
    b1 = jnp.zeros((1, hidden), jnp.float32)
    w2 = 0.1 * jax.random.normal(ks[1], (hidden, FEAT), jnp.float32)
    b2 = 0.01 * jax.random.normal(ks[2], (1, FEAT), jnp.float32)
    wls = 0.05 * jax.random.normal(ks[3], (FEAT, FEAT), jnp.float32)
    bls = jnp.zeros((1, FEAT), jnp.float32)
    wt = 0.05 * jax.random.normal(ks[4], (FEAT, FEAT), jnp.float32)
    bt = 0.01 * jax.random.normal(ks[5], (1, FEAT), jnp.float32)
    return (w1, b1, w2, b2, wls, bls, wt, bt)


if __name__ == "__main__":
    key = jax.random.PRNGKey(0)
    k_enc, k_part, k_param = jax.random.split(key, 3)

    n_batch, n_particles, state_dim = 2, 8, 4
    encodings = jax.random.normal(k_enc, (n_batch, FEAT), jnp.float32)
    update_particles = jax.random.normal(
        k_part, (n_batch, n_particles, state_dim), jnp.float32)
    params = init_params(k_param, state_dim=state_dim, hidden=32)

    # fp32 MXU operands: matches the fp32 torch reference tightly.
    lik = jax.block_until_ready(
        measurement_model_cglow(encodings, update_particles, params))
    ref = _reference(encodings, update_particles, params)
    assert lik.shape == (n_batch, n_particles)
    assert bool(jnp.allclose(lik, ref, rtol=2e-3, atol=5e-3)), "fp32 mismatch vs reference"

    # bf16 MXU operands (v6e/v7x throughput path); validated against a reference that
    # uses the same bf16 operand rounding with fp32 accumulation.
    lik_bf16 = jax.block_until_ready(
        measurement_model_cglow(encodings, update_particles, params,
                                matmul_dtype=jnp.bfloat16))
    ref_bf16 = _reference(encodings, update_particles, params,
                          matmul_dtype=jnp.bfloat16)
    assert bool(jnp.allclose(lik_bf16, ref_bf16, rtol=2e-2, atol=1e-1)), \
        "bf16 mismatch vs bf16 reference"

    print("KERNEL_OK")
</pallas_src>

<mosaic_0001>
module attributes {stable_mosaic.version = 11 : i64} {
  func.func @_measurement_kernel(%arg0: i32, %arg1: memref<128x4xf32, #tpu.memory_space<vmem>>, %arg2: memref<1x1x256xf32, #tpu.memory_space<vmem>>, %arg3: memref<1x1x256xf32, #tpu.memory_space<vmem>>, %arg4: memref<4x32xf32, #tpu.memory_space<vmem>>, %arg5: memref<1x32xf32, #tpu.memory_space<vmem>>, %arg6: memref<32x256xf32, #tpu.memory_space<vmem>>, %arg7: memref<1x256xf32, #tpu.memory_space<vmem>>, %arg8: memref<1x1x128xf32, #tpu.memory_space<vmem>>) attributes {dimension_semantics = [#tpu.dimension_semantics<parallel>], iteration_bounds = array<i64: 2>, scalar_prefetch = 0 : i64, scratch_operands = 0 : i64, tpu.core_type = #tpu.core_type<tc>, window_params = [{transform_indices = @transform_0, window_bounds = array<i64: 128, 4>}, {transform_indices = @transform_1, window_bounds = array<i64: 1, 1, 256>}, {transform_indices = @transform_2, window_bounds = array<i64: 1, 1, 256>}, {pipeline_mode = #tpu.pipeline_mode<synchronous>, transform_indices = @transform_3, window_bounds = array<i64: 4, 32>}, {pipeline_mode = #tpu.pipeline_mode<synchronous>, transform_indices = @transform_4, window_bounds = array<i64: 1, 32>}, {pipeline_mode = #tpu.pipeline_mode<synchronous>, transform_indices = @transform_5, window_bounds = array<i64: 32, 256>}, {pipeline_mode = #tpu.pipeline_mode<synchronous>, transform_indices = @transform_6, window_bounds = array<i64: 1, 256>}, {transform_indices = @transform_7, window_bounds = array<i64: 1, 1, 128>}]} {
    %c0 = arith.constant 0 : index
    %c0_0 = arith.constant 0 : index
    %0 = vector.load %arg1[%c0, %c0_0] : memref<128x4xf32, #tpu.memory_space<vmem>>, vector<128x4xf32>
    %c0_1 = arith.constant 0 : index
    %c0_2 = arith.constant 0 : index
    %1 = vector.load %arg4[%c0_1, %c0_2] : memref<4x32xf32, #tpu.memory_space<vmem>>, vector<4x32xf32>
    %cst = arith.constant dense<0.000000e+00> : vector<128x32xf32>
    %2 = tpu.matmul %0, %1, %cst {dimension_numbers = #tpu.dot_dimension_numbers<[1], [0], [0], [1], [0, 0, 1, 1], [], []>} : vector<128x4xf32>, vector<4x32xf32>, vector<128x32xf32> -> vector<128x32xf32>
    %c0_3 = arith.constant 0 : index
    %c0_4 = arith.constant 0 : index
    %3 = vector.load %arg5[%c0_3, %c0_4] : memref<1x32xf32, #tpu.memory_space<vmem>>, vector<1x32xf32>
    %4 = vector.broadcast %3 : vector<1x32xf32> to vector<128x32xf32>
    %5 = arith.addf %2, %4 : vector<128x32xf32>
    %cst_5 = arith.constant 0.000000e+00 : f32
    %6 = vector.broadcast %cst_5 : f32 to vector<128x32xf32>
    %7 = arith.maximumf %5, %6 : vector<128x32xf32>
    %c0_6 = arith.constant 0 : index
    %c0_7 = arith.constant 0 : index
    %8 = vector.load %arg6[%c0_6, %c0_7] : memref<32x256xf32, #tpu.memory_space<vmem>>, vector<32x256xf32>
    %cst_8 = arith.constant dense<0.000000e+00> : vector<128x256xf32>
    %9 = tpu.matmul %7, %8, %cst_8 {dimension_numbers = #tpu.dot_dimension_numbers<[1], [0], [0], [1], [0, 0, 1, 1], [], []>} : vector<128x32xf32>, vector<32x256xf32>, vector<128x256xf32> -> vector<128x256xf32>
    %c0_9 = arith.constant 0 : index
    %c0_10 = arith.constant 0 : index
    %10 = vector.load %arg7[%c0_9, %c0_10] : memref<1x256xf32, #tpu.memory_space<vmem>>, vector<1x256xf32>
    %11 = vector.broadcast %10 : vector<1x256xf32> to vector<128x256xf32>
    %12 = arith.addf %9, %11 : vector<128x256xf32>
    %13 = vector.shape_cast %12 : vector<128x256xf32> to vector<1x128x256xf32>
    %c0_11 = arith.constant 0 : index
    %c0_12 = arith.constant 0 : index
    %c0_13 = arith.constant 0 : index
    %14 = vector.load %arg3[%c0_11, %c0_12, %c0_13] : memref<1x1x256xf32, #tpu.memory_space<vmem>>, vector<1x1x256xf32>
    %15 = vector.broadcast %14 : vector<1x1x256xf32> to vector<1x128x256xf32>
    %16 = arith.addf %13, %15 : vector<1x128x256xf32>
    %c0_14 = arith.constant 0 : index
    %c0_15 = arith.constant 0 : index
    %c0_16 = arith.constant 0 : index
    %17 = vector.load %arg2[%c0_14, %c0_15, %c0_16] : memref<1x1x256xf32, #tpu.memory_space<vmem>>, vector<1x1x256xf32>
    %18 = arith.mulf %16, %16 : vector<1x128x256xf32>
    "tpu.trace_start"() <{level = 10 : i32, message = "bqf,bpf->bqp"}> : () -> ()
    %cst_17 = arith.constant dense<0.000000e+00> : vector<1x1x128xf32>
    %19 = tpu.matmul %17, %18, %cst_17 {dimension_numbers = #tpu.dot_dimension_numbers<[2], [2], [1], [1], [0, 0, 0, 1, 1, 1], [0], [0]>} : vector<1x1x256xf32>, vector<1x128x256xf32>, vector<1x1x128xf32> -> vector<1x1x128xf32>
    "tpu.trace_stop"() : () -> ()
    %20 = tpu.iota {dimensions = array<i32: 2>} : vector<1x1x128xi32>
    %c8_i32 = arith.constant 8 : i32
    %21 = vector.broadcast %c8_i32 : i32 to vector<1x1x128xi32>
    %22 = arith.cmpi slt, %20, %21 : vector<1x1x128xi32>
    %cst_18 = arith.constant 1.000000e+30 : f32
    %23 = vector.broadcast %cst_18 : f32 to vector<1x1x128xf32>
    %24 = arith.select %22, %19, %23 : vector<1x1x128xi1>, vector<1x1x128xf32>
    %cst_19 = arith.constant dense<0x7F800000> : vector<1x1xf32>
    %25 = vector.multi_reduction <minimumf>, %24, %cst_19 [2] : vector<1x1x128xf32> to vector<1x1xf32>
    %26 = vector.shape_cast %25 : vector<1x1xf32> to vector<1x1x1xf32>
    %27 = vector.broadcast %26 : vector<1x1x1xf32> to vector<1x1x128xf32>
    %28 = arith.subf %24, %27 : vector<1x1x128xf32>
    %cst_20 = arith.constant -5.000000e-01 : f32
    %29 = vector.broadcast %cst_20 : f32 to vector<1x1x128xf32>
    %30 = arith.mulf %29, %28 : vector<1x1x128xf32>
    %c0_21 = arith.constant 0 : index
    %c0_22 = arith.constant 0 : index
    %c0_23 = arith.constant 0 : index
    %31 = vector.load %arg8[%c0_21, %c0_22, %c0_23] : memref<1x1x128xf32, #tpu.memory_space<vmem>>, vector<1x1x128xf32>
    tpu.vector_store %arg8[%c0_21, %c0_22, %c0_23], %30 {strides = array<i32>} : memref<1x1x128xf32, #tpu.memory_space<vmem>>, vector<1x1x128xf32>,
    return
  }
  func.func @transform_0(%arg0: i32) -> (i32, i32) {
    %c0_i32 = arith.constant 0 : i32
    %c0_i32_0 = arith.constant 0 : i32
    return %arg0, %c0_i32 : i32, i32
  }
  func.func @transform_1(%arg0: i32) -> (i32, i32, i32) {
    %c0_i32 = arith.constant 0 : i32
    %c0_i32_0 = arith.constant 0 : i32
    %c0_i32_1 = arith.constant 0 : i32
    return %arg0, %c0_i32, %c0_i32_0 : i32, i32, i32
  }
  func.func @transform_2(%arg0: i32) -> (i32, i32, i32) {
    %c0_i32 = arith.constant 0 : i32
    %c0_i32_0 = arith.constant 0 : i32
    %c0_i32_1 = arith.constant 0 : i32
    return %arg0, %c0_i32, %c0_i32_0 : i32, i32, i32
  }
  func.func @transform_3(%arg0: i32) -> (i32, i32) {
    %c0_i32 = arith.constant 0 : i32
    %c0_i32_0 = arith.constant 0 : i32
    %c0_i32_1 = arith.constant 0 : i32
    return %c0_i32, %c0_i32_0 : i32, i32
  }
  func.func @transform_4(%arg0: i32) -> (i32, i32) {
    %c0_i32 = arith.constant 0 : i32
    %c0_i32_0 = arith.constant 0 : i32
    %c0_i32_1 = arith.constant 0 : i32
    return %c0_i32, %c0_i32_0 : i32, i32
  }
  func.func @transform_5(%arg0: i32) -> (i32, i32) {
    %c0_i32 = arith.constant 0 : i32
    %c0_i32_0 = arith.constant 0 : i32
    %c0_i32_1 = arith.constant 0 : i32
    return %c0_i32, %c0_i32_0 : i32, i32
  }
  func.func @transform_6(%arg0: i32) -> (i32, i32) {
    %c0_i32 = arith.constant 0 : i32
    %c0_i32_0 = arith.constant 0 : i32
    %c0_i32_1 = arith.constant 0 : i32
    return %c0_i32, %c0_i32_0 : i32, i32
  }
  func.func @transform_7(%arg0: i32) -> (i32, i32, i32) {
    %c0_i32 = arith.constant 0 : i32
    %c0_i32_0 = arith.constant 0 : i32
    %c0_i32_1 = arith.constant 0 : i32
    return %arg0, %c0_i32, %c0_i32_0 : i32, i32, i32
  }
}

</mosaic_0001>

<bundles_post_ra>
// kernel: tpu_custom_call.1
= control target key start
LH: loop header
LB: loop body
LE: loop exit
PB: predicated region body
PF: predicated region fallthrough
CT: control target
= control target key end

     0   :  { %12 = vsyncpa [#allocation3], 0  ;;  %s1626_s0 = inlined_call_operand.vmem [shape: f32[256,4], index: 0, kind: input, shape index: {}]   ;;  %s1627_s1 = inlined_call_operand.vmem [shape: f32[2,1,256], index: 1, kind: input, shape index: {}]   ;;  %s1628_s2 = inlined_call_operand.vmem [shape: f32[2,1,256], index: 2, kind: input, shape index: {}]   ;;  %s1629_s3 = inlined_call_operand.vmem [shape: f32[4,32], index: 3, kind: input, shape index: {}]   ;;  %s1630_s4 = inlined_call_operand.vmem [shape: f32[1,32], index: 4, kind: input, shape index: {}]   ;;  %s1631_s5 = inlined_call_operand.vmem [shape: f32[32,256], index: 5, kind: input, shape index: {}]   ;;  %s1632_s6 = inlined_call_operand.vmem [shape: f32[1,256], index: 6, kind: input, shape index: {}]   ;;  %s1633_s7 = inlined_call_operand.hbm [shape: f32[2,1,128], index: 7, kind: output, shape index: {}]  }
   0x1   :  { %14 = vsyncpa [#allocation3 + $0x1], 0  ;;  %s1315_s24 = smov 0   ;;  %s1317_s25 = smov 0  }
   0x2   :  { %s1319_s26 = smov 0   ;;  %s1321_s27 = smov 0  }
   0x3 LB: > { %s1336_s28 = sadd.s32 4294967295, %s1271_s27   ;;  %s1041_s29 = sadd.s32 4294967294, %s1271_s27   ;;  %s1271_s27 = sphi %s1321_s27, %s1639_s27   ;;  %s1267_s26 = sphi %s1319_s26, %s1638_s26   ;;  %s1263_s25 = sphi %s1317_s25, %s1637_s25   ;;  %s1259_s24 = sphi %s1315_s24, %s1636_s24  }
   0x4   : > { %s1340_s30 = sadd.s32 1, %s1271_s27   ;;  %s189_s8 = sadd.s32 1, %s1267_s26 }
   0x5   : > { %s186_s9 = ssub.s32 %s1271_s27, %s1340_s30  ;;  %p199_p0 = scmp.ne.s32.totalorder %s1267_s26, %s1263_s25 }
   0x6   : > { %p187_p1 = scmp.eq.s32.totalorder %s186_s9, 0  ;;  %p200_p2 = scmp.eq.s32.totalorder %s1336_s28, 1 }
   0x7   : > { %p205_p3 = scmp.ne.s32.totalorder %s1263_s25, %s1259_s24  ;;  %p206_p4 = scmp.eq.s32.totalorder %s1041_s29, 1 }
   0x8   : > { %s1351_s10 = scalar_select %p187_p1, %s1267_s26, %s189_s8  }
   0x9   : > { %p1353_p5 = por %p200_p2, %p199_p0  ;;  %p1357_p6 = por %p206_p4, %p205_p3 }
   0xa   : > { %p1044_p7 = scmp.ge.s32.totalorder %s1271_s27, 1  ;;  %p259_p8 = scmp.lt.s32.totalorder %s1271_s27, 3 }
   0xc   : > { %p260_p9 = pnand %p1044_p7, %p259_p8 }
   0xd   : > { %v328_v0 = vld [vmem:[%s1629_s3] sm:$0xf] (!%p260_p9)  ;;  %vm385_vm0 = vcmask (!%p260_p9), 1043456   ;;  %s1367_s15 = sshll.u32 (!%p260_p9), %s1336_s28, 4  ;;  %v551_v1 = vld [vmem:[%s1631_s5 + $0x8] sm:$0xff] (!%p260_p9)  ;;  %v553_v2 = vld [vmem:[%s1631_s5 + $0x18] sm:$0xff] (!%p260_p9) }
   0xe   : > { %263 = sbr.rel (%p260_p9) target bundleno = 907 (0x38b), region = 48  ;;  %1103 = vmatprep.subr.msk.mxu0 (!%p260_p9), %vm385_vm0, %v328_v0  ;;  %p299_p10 = scmp.lt.s32.totalorder (!%p260_p9), %s1367_s15, 31  ;;  %v550_v3 = vld [vmem:[%s1631_s5] sm:$0xff] (!%p260_p9)  ;;  %v552_v4 = vld [vmem:[%s1631_s5 + $0x10] sm:$0xff] (!%p260_p9)  ;;  %v1129_v5 = vpack.c.bf16 (!%p260_p9), %v553_v2, %v551_v1  ;;  %vm336_vm1 = vcmask (!%p260_p9), 31744   ;;  %v555_v23 = vld [vmem:[%s1631_s5 + $0x28] sm:$0xff] (!%p260_p9) }
   0xf   : > { %1104 = vmatpush3.msk.msra.mxu0 (!%p260_p9), %vm385_vm0, %v328_v0  ;;  %v1131_v6 = vpack.c.bf16 (!%p260_p9), %v552_v4, %v550_v3  ;;  %v557_v24 = vld [vmem:[%s1631_s5 + $0x38] sm:$0xff] (!%p260_p9)  ;;  %v554_v26 = vld [vmem:[%s1631_s5 + $0x20] sm:$0xff] (!%p260_p9)  ;;  %v556_v27 = vld [vmem:[%s1631_s5 + $0x30] sm:$0xff] (!%p260_p9)  ;;  %v1273_v29 = vmov (!%p260_p9), 0.0   ;;  %vm570_vm2 = vcmask (!%p260_p9), 261120   ;;  %p304_p11 = scmp.lt.s32.totalorder (!%p260_p9), %s1336_s28, 1 }
  0x10   : > { %1130 = vmatprep.subr.bf16.mxu1 (!%p260_p9), %v1129_v5  ;;  %v1133_v25 = vpack.c.bf16 (!%p260_p9), %v557_v24, %v555_v23  ;;  %v1135_v28 = vpack.c.bf16 (!%p260_p9), %v556_v27, %v554_v26  ;;  %683 = vmatprep.mubr.f32.mxu1 (!%p260_p9), %v1273_v29  ;;  %v1436_v30 = vld [vmem:[%s1630_s4] ss:$0 sm:$0xff] (!%p260_p9)  ;;  %vm942_vm4 = vcmask (!%p260_p9), 1040384   ;;  %s296_s21 = sand.u32 (!%p260_p9), 1, %s1263_s25  }
  0x11   : > { %1132 = vmatpush1.bf16.msra.mxu1 (!%p260_p9), %v1131_v6  ;;  %s297_s22 = scalar_lea.vmem (!%p260_p9), [#allocation2], %s296_s21  ;;  %s950_s13 = scalar_lea.sflag (!%p260_p9), [#allocation3], %s296_s21 }
  0x12   : > { %1134 = vmatprep.subr.bf16.mxu1 (!%p260_p9), %v1133_v25  ;;  %s962_s23 = sshll.u32 (!%p260_p9), %s297_s22, 4  ;;  %s1586_s23 = int_to_ptr.vmem [resolvable:$true] %s962_s23 }
  0x15   : > { %s300_s29 = scalar_select %p299_p10, %s1367_s15, 31  ;;  %1136 = vmatpush1.bf16.msra.mxu1 %v1135_v28 }
  0x16   : > { %s1641_s28 = smov (!%p304_p11, %s1336_s28), 1 }
  0x17   : > { %s1046_s8 = sshll.u32 %s300_s29, 3  ;;  %s1047_s9 = sshll.u32 %s1641_s28, 1 }
  0x18   : > { %s1386_s14 = scalar_lea.vmem %s1626_s0, %s1046_s8  ;;  %s307_s16 = scalar_lea.vmem %s1627_s1, %s1047_s9 }
  0x19   : > { %v312_v7 = vld [vmem:[%s1386_s14] sm:$0xff]  ;;  %v313_v8 = vld [vmem:[%s1386_s14 + $0x8] sm:$0xff]  ;;  %v314_v9 = vld [vmem:[%s1386_s14 + $0x10] sm:$0xff]  ;;  %s311_s28 = scalar_lea.vmem %s1628_s2, %s1047_s9  ;;  %s1584_s9 = scalar_lea.hbm %s1633_s7, %s1367_s15 }
  0x1a   : > { %1105 = vmatprep.mubr.msk.f32.mxu0 %vm336_vm1, %v312_v7  ;;  %v315_v10 = vld [vmem:[%s1386_s14 + $0x18] sm:$0xff]  ;;  %v316_v11 = vld [vmem:[%s1386_s14 + $0x20] sm:$0xff]  ;;  %v317_v12 = vld [vmem:[%s1386_s14 + $0x28] sm:$0xff] }
  0x1b   : > { %1106 = vmatmul.mubr.msk.f32.vlgmr.msra.gmra.mrb[0].mxu0 %vm336_vm1, %v313_v8  ;;  %v318_v13 = vld [vmem:[%s1386_s14 + $0x30] sm:$0xff]  ;;  %v319_v14 = vld [vmem:[%s1386_s14 + $0x38] sm:$0xff]  ;;  %v320_v15 = vld [vmem:[%s1386_s14 + $0x40] sm:$0xff] }
  0x1c   : > { %1108 = vmatprep.mubr.msk.f32.mxu0 %vm336_vm1, %v314_v9  ;;  %v321_v16 = vld [vmem:[%s1386_s14 + $0x48] sm:$0xff]  ;;  %v322_v17 = vld [vmem:[%s1386_s14 + $0x50] sm:$0xff]  ;;  %v323_v18 = vld [vmem:[%s1386_s14 + $0x58] sm:$0xff] }
  0x1d   : > { %v324_v19 = vld [vmem:[%s1386_s14 + $0x60] sm:$0xff]  ;;  %v325_v20 = vld [vmem:[%s1386_s14 + $0x68] sm:$0xff]  ;;  %v326_v21 = vld [vmem:[%s1386_s14 + $0x70] sm:$0xff] }
  0x1e   : > { %v327_v22 = vld [vmem:[%s1386_s14 + $0x78] sm:$0xff]  ;;  %v780_v23 = vld [vmem:[%s311_s28] sm:$0x3]  ;;  %s1209_s14 = scalar_lea.vmem %s1586_s23, 16 }
  0x1f   : > { %1109 = vmatmul.mubr.msk.f32.gmra.mrb[2].mxu0 %vm336_vm1, %v315_v10  ;;  %p1210_p12 = scmp.ne.s32.totalorder %s1586_s23, %s1209_s14 }
  0x20   : > { %1111 = vmatprep.mubr.msk.f32.mxu0 %vm336_vm1, %v316_v11 }
  0x21   : > { %p1211_p13 = pnand %p1210_p12, %p1353_p5 }
  0x23   : > { %1112 = vmatmul.mubr.msk.f32.gmra.mrb[4].mxu0 %vm336_vm1, %v317_v12  ;;  %p1212_p0 = pneg %p1211_p13 }
  0x24   : > { %1114 = vmatprep.mubr.msk.f32.mxu0 %vm336_vm1, %v318_v13 }
  0x27   : > { %1115 = vmatmul.mubr.msk.f32.gmra.mrb[6].mxu0 %vm336_vm1, %v319_v14 }
  0x28   : > { %1117 = vmatprep.mubr.msk.f32.mxu0 %vm336_vm1, %v320_v15  ;;  %v560_v15 = vlaneseq }
  0x2b   : > { %1118 = vmatmul.mubr.msk.f32.gmra.mrb[8].mxu0 %vm336_vm1, %v321_v16  ;;  %v561_v16 = vshrl.u32 %v560_v15, 7 }
  0x2c   : > { %1120 = vmatprep.mubr.msk.f32.mxu0 %vm336_vm1, %v322_v17 }
  0x2d   : > { %v566_v17 = vsub.s32 1, %v561_v16 }
  0x2f   : > { %1121 = vmatmul.mubr.msk.f32.gmra.mrb[10].mxu0 %vm336_vm1, %v323_v18  ;;  %v1491_v18 = vld [vmem:[%s307_s16] sm:$0x3]  ;;  %s1274_s16 = smov [#allocation2]  }
  0x30   : > { %1123 = vmatprep.mubr.msk.f32.mxu0 %vm336_vm1, %v324_v19  ;;  %v865_v19 = vrot.slane %v1491_v18, %v566_v17  ;;  %s1213_s17 = sshll.u32 %s1274_s16, 4  ;;  %s1214_s17 = int_to_ptr.vmem [resolvable:$false] %s1213_s17 }
  0x31   : > { %s1215_s18 = scalar_lea.vmem %s1214_s17, 32  ;;  %p1216_p1 = scmp.lt.s32.totalorder %s1586_s23, %s1214_s17 }
  0x32   : > { %p1217_p2 = scmp.lt.s32.totalorder %s1215_s18, %s1209_s14 }
  0x33   : > { %1124 = vmatmul.mubr.msk.f32.gmra.mrb[12].mxu0 %vm336_vm1, %v325_v20  ;;  %v1494_v20 = vsub.s32 0, %v561_v16 }
  0x34   : > { %1126 = vmatprep.mubr.msk.f32.mxu0 %vm336_vm1, %v326_v21  ;;  %v558_v21 = vld [vmem:[%s1632_s6] sm:$0x3]  ;;  %p1218_p3 = por %p1217_p2, %p1216_p1 }
  0x35   : > { %v1505_v24 = vrot.slane %v558_v21, %v566_v17  ;;  %v1509_v27 = vrot.slane %v780_v23, %v1494_v20 }
  0x36   : > { %p1219_p4 = pnand %p1218_p3, %p1212_p0 }
  0x37   : > { %1127 = vmatmul.mubr.msk.f32.gmra.mrb[14].mxu0 %vm336_vm1, %v327_v22  ;;  %v1503_v22 = vrot.slane %v558_v21, %v1494_v20 }
  0x38   : > { %932 = vmatprep.mubr.f32.mxu0 %v865_v19 }
  0xee   : > { %v1107_v31 = vpop.f32.mrb[0].mxu0 }
  0xef   : > { %v455_v32 = vpop.f32.mrb[1].mxu0  ;;  %v461_v34 = vadd.f32 %v1107_v31, %v1436_v30 }
  0xf0   : > { %v456_v33 = vadd.f32 %v1436_v30, %v455_v32 }
  0xf1   : > { %v535_v39 = vmax.f32 %v461_v34, 0.0 }
  0xf2   : > { %v534_v35 = vmax.f32 %v456_v33, 0.0  ;;  %v1110_v36 = vpop.f32.mrb[2].mxu0 }
  0xf3   : > { %v465_v37 = vpop.f32.mrb[3].mxu0  ;;  %v471_v43 = vadd.f32 %v1110_v36, %v1436_v30 }
  0xf4   : > { %1067 = vmatmul.mubr.msk.f32.vlgmr.msra.gmra.mrb[0].mxu1 %vm570_vm2, %v534_v35  ;;  %v466_v38 = vadd.f32 %v1436_v30, %v465_v37 }
  0xf5   : > { %689 = vmatprep.mubr.f32.mxu1 %v1273_v29  ;;  %v537_v47 = vmax.f32 %v471_v43, 0.0 }
  0xf6   : > { %v1113_v40 = vpop.f32.mrb[4].mxu0  ;;  %v536_v42 = vmax.f32 %v466_v38, 0.0 }
  0xf7   : > { %v475_v41 = vpop.f32.mrb[5].mxu0  ;;  %v481_v51 = vadd.f32 %v1113_v40, %v1436_v30 }
  0xf8   : > { %1068 = vmatmul.mubr.msk.f32.gmra.mrb[2].mxu1 %vm570_vm2, %v535_v39  ;;  %v476_v46 = vadd.f32 %v1436_v30, %v475_v41 }
  0xf9   : > { %695 = vmatprep.mubr.f32.mxu1 %v1273_v29  ;;  %v539_v55 = vmax.f32 %v481_v51, 0.0 }
  0xfa   : > { %v1116_v44 = vpop.f32.mrb[6].mxu0  ;;  %v538_v50 = vmax.f32 %v476_v46, 0.0 }
  0xfb   : > { %v485_v45 = vpop.f32.mrb[7].mxu0  ;;  %v491_v59 = vadd.f32 %v1116_v44, %v1436_v30 }
  0xfc   : > { %1069 = vmatmul.mubr.msk.f32.gmra.mrb[4].mxu1 %vm570_vm2, %v536_v42  ;;  %v486_v54 = vadd.f32 %v1436_v30, %v485_v45 }
  0xfd   : > { %701 = vmatprep.mubr.f32.mxu1 %v1273_v29  ;;  %v541_v63 = vmax.f32 %v491_v59, 0.0 }
  0xfe   : > { %v1119_v48 = vpop.f32.mrb[8].mxu0  ;;  %v540_v58 = vmax.f32 %v486_v54, 0.0 }
  0xff   : > { %v495_v49 = vpop.f32.mrb[9].mxu0  ;;  %v501_v1 = vadd.f32 %v1119_v48, %v1436_v30 }
 0x100   : > { %1070 = vmatmul.mubr.msk.f32.gmra.mrb[6].mxu1 %vm570_vm2, %v537_v47  ;;  %v496_v62 = vadd.f32 %v1436_v30, %v495_v49 }
 0x101   : > { %707 = vmatprep.mubr.f32.mxu1 %v1273_v29  ;;  %v543_v3 = vmax.f32 %v501_v1, 0.0 }
 0x102   : > { %v1122_v52 = vpop.f32.mrb[10].mxu0  ;;  %v542_v0 = vmax.f32 %v496_v62, 0.0 }
 0x103   : > { %v505_v53 = vpop.f32.mrb[11].mxu0  ;;  %v511_v5 = vadd.f32 %v1122_v52, %v1436_v30 }
 0x104   : > { %1071 = vmatmul.mubr.msk.f32.gmra.mrb[8].mxu1 %vm570_vm2, %v538_v50  ;;  %v506_v2 = vadd.f32 %v1436_v30, %v505_v53 }
 0x105   : > { %713 = vmatprep.mubr.f32.mxu1 %v1273_v29  ;;  %v545_v7 = vmax.f32 %v511_v5, 0.0 }
 0x106   : > { %v1125_v56 = vpop.f32.mrb[12].mxu0  ;;  %v544_v4 = vmax.f32 %v506_v2, 0.0 }
 0x107   : > { %v515_v57 = vpop.f32.mrb[13].mxu0  ;;  %v521_v9 = vadd.f32 %v1125_v56, %v1436_v30 }
 0x108   : > { %1072 = vmatmul.mubr.msk.f32.gmra.mrb[10].mxu1 %vm570_vm2, %v539_v55  ;;  %v516_v6 = vadd.f32 %v1436_v30, %v515_v57 }
 0x109   : > { %719 = vmatprep.mubr.f32.mxu1 %v1273_v29  ;;  %v547_v11 = vmax.f32 %v521_v9, 0.0 }
 0x10a   : > { %v1128_v60 = vpop.f32.mrb[14].mxu0  ;;  %v546_v8 = vmax.f32 %v516_v6, 0.0 }
 0x10b   : > { %v525_v61 = vpop.f32.mrb[15].mxu0  ;;  %v531_v13 = vadd.f32 %v1128_v60, %v1436_v30 }
 0x10c   : > { %1073 = vmatmul.mubr.msk.f32.gmra.mrb[12].mxu1 %vm570_vm2, %v540_v58  ;;  %v526_v10 = vadd.f32 %v1436_v30, %v525_v61  ;;  %v1512_v30 = vrot.slane %v780_v23, %v566_v17 }
 0x10d   : > { %725 = vmatprep.mubr.f32.mxu1 %v1273_v29  ;;  %v549_v14 = vmax.f32 %v531_v13, 0.0 }
 0x10e   : > { %v548_v12 = vmax.f32 %v526_v10, 0.0 }
 0x110   : > { %1074 = vmatmul.mubr.msk.f32.gmra.mrb[14].mxu1 %vm570_vm2, %v541_v63 }
 0x111   : > { %731 = vmatprep.mubr.f32.mxu1 %v1273_v29 }
 0x114   : > { %1075 = vmatmul.mubr.msk.f32.gmra.mrb[16].mxu1 %vm570_vm2, %v542_v0 }
 0x115   : > { %737 = vmatprep.mubr.f32.mxu1 %v1273_v29 }
 0x118   : > { %1076 = vmatmul.mubr.msk.f32.gmra.mrb[18].mxu1 %vm570_vm2, %v543_v3 }
 0x119   : > { %743 = vmatprep.mubr.f32.mxu1 %v1273_v29 }
 0x11c   : > { %1077 = vmatmul.mubr.msk.f32.gmra.mrb[20].mxu1 %vm570_vm2, %v544_v4 }
 0x11d   : > { %749 = vmatprep.mubr.f32.mxu1 %v1273_v29 }
 0x120   : > { %1078 = vmatmul.mubr.msk.f32.gmra.mrb[22].mxu1 %vm570_vm2, %v545_v7 }
 0x121   : > { %755 = vmatprep.mubr.f32.mxu1 %v1273_v29 }
 0x124   : > { %1079 = vmatmul.mubr.msk.f32.gmra.mrb[24].mxu1 %vm570_vm2, %v546_v8 }
 0x125   : > { %761 = vmatprep.mubr.f32.mxu1 %v1273_v29 }
 0x128   : > { %1080 = vmatmul.mubr.msk.f32.gmra.mrb[26].mxu1 %vm570_vm2, %v547_v11 }
 0x129   : > { %767 = vmatprep.mubr.f32.mxu1 %v1273_v29 }
 0x12c   : > { %1081 = vmatmul.mubr.msk.f32.gmra.mrb[28].mxu1 %vm570_vm2, %v548_v12 }
 0x12d   : > { %773 = vmatprep.mubr.f32.mxu1 %v1273_v29 }
 0x130   : > { %1082 = vmatmul.mubr.msk.f32.gmra.mrb[30].mxu1 %vm570_vm2, %v549_v14 }
 0x1c7   : > { %v685_v25 = vpop.f32.mrb[0].mxu1 }
 0x1c8   : > { %v686_v26 = vadd.f32 %v685_v25, %v1503_v22  ;;  %v687_v28 = vpop.f32.mrb[1].mxu1 }
 0x1c9   : > { %v688_v29 = vadd.f32 %v687_v28, %v1505_v24 }
 0x1ca   : > { %v792_v32 = vadd.f32 %v1509_v27, %v686_v26 }
 0x1cb   : > { %v691_v31 = vpop.f32.mrb[2].mxu1  ;;  %v793_v35 = vadd.f32 %v1512_v30, %v688_v29 }
 0x1cc   : > { %v692_v33 = vadd.f32 %v691_v31, %v1503_v22  ;;  %v693_v34 = vpop.f32.mrb[3].mxu1  ;;  %v825_v40 = vmul.f32 %v792_v32, %v792_v32 }
 0x1cd   : > { %v694_v36 = vadd.f32 %v693_v34, %v1505_v24  ;;  %v826_v44 = vmul.f32 %v793_v35, %v793_v35 }
 0x1ce   : > { %v794_v37 = vadd.f32 %v1509_v27, %v692_v33 }
 0x1cf   : > { %v795_v38 = vadd.f32 %v1512_v30, %v694_v36  ;;  %v697_v39 = vpop.f32.mrb[4].mxu1 }
 0x1d0   : > { %v827_v41 = vmul.f32 %v794_v37, %v794_v37  ;;  %v698_v42 = vadd.f32 %v697_v39, %v1503_v22  ;;  %v699_v43 = vpop.f32.mrb[5].mxu1 }
 0x1d1   : > { %v828_v45 = vmul.f32 %v795_v38, %v795_v38  ;;  %v700_v46 = vadd.f32 %v699_v43, %v1505_v24 }
 0x1d2   : > { %v1139_v47 = vpack.c.bf16 %v827_v41, %v825_v40  ;;  %v796_v50 = vadd.f32 %v1509_v27, %v698_v42 }
 0x1d3   : > { %v703_v48 = vpop.f32.mrb[6].mxu1  ;;  %v1137_v49 = vpack.c.bf16 %v828_v45, %v826_v44  ;;  %v797_v53 = vadd.f32 %v1512_v30, %v700_v46 }
 0x1d4   : > { %v704_v51 = vadd.f32 %v703_v48, %v1503_v22  ;;  %v705_v52 = vpop.f32.mrb[7].mxu1  ;;  %v829_v58 = vmul.f32 %v796_v50, %v796_v50 }
 0x1d5   : > { %v706_v54 = vadd.f32 %v705_v52, %v1505_v24  ;;  %1138 = vmatprep.subr.bf16.mxu0 %v1137_v49  ;;  %v830_v62 = vmul.f32 %v797_v53, %v797_v53 }
 0x1d6   : > { %v798_v55 = vadd.f32 %v1509_v27, %v704_v51  ;;  %1140 = vmatpush1.bf16.xpose.msra.mxu0 %v1139_v47 }
 0x1d7   : > { %v799_v56 = vadd.f32 %v1512_v30, %v706_v54  ;;  %v709_v57 = vpop.f32.mrb[8].mxu1 }
 0x1d8   : > { %v831_v59 = vmul.f32 %v798_v55, %v798_v55  ;;  %v710_v60 = vadd.f32 %v709_v57, %v1503_v22  ;;  %v711_v61 = vpop.f32.mrb[9].mxu1 }
 0x1d9   : > { %v832_v63 = vmul.f32 %v799_v56, %v799_v56  ;;  %v712_v0 = vadd.f32 %v711_v61, %v1505_v24 }
 0x1da   : > { %v1143_v1 = vpack.c.bf16 %v831_v59, %v829_v58  ;;  %v800_v4 = vadd.f32 %v1509_v27, %v710_v60 }
 0x1db   : > { %v715_v2 = vpop.f32.mrb[10].mxu1  ;;  %v1141_v3 = vpack.c.bf16 %v832_v63, %v830_v62  ;;  %v801_v7 = vadd.f32 %v1512_v30, %v712_v0 }
 0x1dc   : > { %v716_v5 = vadd.f32 %v715_v2, %v1503_v22  ;;  %v717_v6 = vpop.f32.mrb[11].mxu1  ;;  %v833_v12 = vmul.f32 %v800_v4, %v800_v4 }
 0x1dd   : > { %v718_v8 = vadd.f32 %v717_v6, %v1505_v24  ;;  %1142 = vmatprep.subr.bf16.mxu0 %v1141_v3  ;;  %v834_v17 = vmul.f32 %v801_v7, %v801_v7 }
 0x1de   : > { %v802_v9 = vadd.f32 %v1509_v27, %v716_v5  ;;  %1144 = vmatpush1.bf16.xpose.msra.mxu0 %v1143_v1 }
 0x1df   : > { %v803_v10 = vadd.f32 %v1512_v30, %v718_v8  ;;  %v721_v11 = vpop.f32.mrb[12].mxu1 }
 0x1e0   : > { %v835_v13 = vmul.f32 %v802_v9, %v802_v9  ;;  %v722_v14 = vadd.f32 %v721_v11, %v1503_v22  ;;  %v723_v16 = vpop.f32.mrb[13].mxu1 }
 0x1e1   : > { %v836_v19 = vmul.f32 %v803_v10, %v803_v10  ;;  %v724_v21 = vadd.f32 %v723_v16, %v1505_v24 }
 0x1e2   : > { %v1147_v23 = vpack.c.bf16 %v835_v13, %v833_v12  ;;  %v804_v28 = vadd.f32 %v1509_v27, %v722_v14 }
 0x1e3   : > { %v727_v25 = vpop.f32.mrb[14].mxu1  ;;  %v1145_v26 = vpack.c.bf16 %v836_v19, %v834_v17  ;;  %v805_v32 = vadd.f32 %v1512_v30, %v724_v21 }
 0x1e4   : > { %v728_v29 = vadd.f32 %v727_v25, %v1503_v22  ;;  %v729_v31 = vpop.f32.mrb[15].mxu1  ;;  %v837_v37 = vmul.f32 %v804_v28, %v804_v28 }
 0x1e5   : > { %v730_v33 = vadd.f32 %v729_v31, %v1505_v24  ;;  %1146 = vmatprep.subr.bf16.mxu0 %v1145_v26  ;;  %v838_v41 = vmul.f32 %v805_v32, %v805_v32 }
 0x1e6   : > { %v806_v34 = vadd.f32 %v1509_v27, %v728_v29  ;;  %1148 = vmatpush1.bf16.xpose.msra.mxu0 %v1147_v23 }
 0x1e7   : > { %v807_v35 = vadd.f32 %v1512_v30, %v730_v33  ;;  %v733_v36 = vpop.f32.mrb[16].mxu1 }
 0x1e8   : > { %v839_v38 = vmul.f32 %v806_v34, %v806_v34  ;;  %v734_v39 = vadd.f32 %v733_v36, %v1503_v22  ;;  %v735_v40 = vpop.f32.mrb[17].mxu1 }
 0x1e9   : > { %v840_v42 = vmul.f32 %v807_v35, %v807_v35  ;;  %v736_v43 = vadd.f32 %v735_v40, %v1505_v24 }
 0x1ea   : > { %v1151_v44 = vpack.c.bf16 %v839_v38, %v837_v37  ;;  %v808_v47 = vadd.f32 %v1509_v27, %v734_v39 }
 0x1eb   : > { %v739_v45 = vpop.f32.mrb[18].mxu1  ;;  %v1149_v46 = vpack.c.bf16 %v840_v42, %v838_v41  ;;  %v809_v50 = vadd.f32 %v1512_v30, %v736_v43 }
 0x1ec   : > { %v740_v48 = vadd.f32 %v739_v45, %v1503_v22  ;;  %v741_v49 = vpop.f32.mrb[19].mxu1  ;;  %v841_v55 = vmul.f32 %v808_v47, %v808_v47 }
 0x1ed   : > { %v742_v51 = vadd.f32 %v741_v49, %v1505_v24  ;;  %1150 = vmatprep.subr.bf16.mxu0 %v1149_v46  ;;  %v842_v59 = vmul.f32 %v809_v50, %v809_v50 }
 0x1ee   : > { %v810_v52 = vadd.f32 %v1509_v27, %v740_v48  ;;  %1152 = vmatpush1.bf16.xpose.msra.mxu0 %v1151_v44 }
 0x1ef   : > { %v811_v53 = vadd.f32 %v1512_v30, %v742_v51  ;;  %v745_v54 = vpop.f32.mrb[20].mxu1 }
 0x1f0   : > { %v843_v56 = vmul.f32 %v810_v52, %v810_v52  ;;  %v746_v57 = vadd.f32 %v745_v54, %v1503_v22  ;;  %v747_v58 = vpop.f32.mrb[21].mxu1 }
 0x1f1   : > { %v844_v60 = vmul.f32 %v811_v53, %v811_v53  ;;  %v748_v61 = vadd.f32 %v747_v58, %v1505_v24 }
 0x1f2   : > { %v1155_v62 = vpack.c.bf16 %v843_v56, %v841_v55  ;;  %v812_v1 = vadd.f32 %v1509_v27, %v746_v57 }
 0x1f3   : > { %v751_v63 = vpop.f32.mrb[22].mxu1  ;;  %v1153_v0 = vpack.c.bf16 %v844_v60, %v842_v59  ;;  %v813_v4 = vadd.f32 %v1512_v30, %v748_v61 }
 0x1f4   : > { %v752_v2 = vadd.f32 %v751_v63, %v1503_v22  ;;  %v753_v3 = vpop.f32.mrb[23].mxu1  ;;  %v845_v9 = vmul.f32 %v812_v1, %v812_v1 }
 0x1f5   : > { %v754_v5 = vadd.f32 %v753_v3, %v1505_v24  ;;  %1154 = vmatprep.subr.bf16.mxu0 %v1153_v0  ;;  %v846_v13 = vmul.f32 %v813_v4, %v813_v4 }
 0x1f6   : > { %v814_v6 = vadd.f32 %v1509_v27, %v752_v2  ;;  %1156 = vmatpush1.bf16.xpose.msra.mxu0 %v1155_v62 }
 0x1f7   : > { %v815_v7 = vadd.f32 %v1512_v30, %v754_v5  ;;  %v757_v8 = vpop.f32.mrb[24].mxu1 }
 0x1f8   : > { %v847_v10 = vmul.f32 %v814_v6, %v814_v6  ;;  %v758_v11 = vadd.f32 %v757_v8, %v1503_v22  ;;  %v759_v12 = vpop.f32.mrb[25].mxu1 }
 0x1f9   : > { %v848_v14 = vmul.f32 %v815_v7, %v815_v7  ;;  %v760_v16 = vadd.f32 %v759_v12, %v1505_v24 }
 0x1fa   : > { %v1159_v17 = vpack.c.bf16 %v847_v10, %v845_v9  ;;  %v816_v23 = vadd.f32 %v1509_v27, %v758_v11 }
 0x1fb   : > { %v763_v19 = vpop.f32.mrb[26].mxu1  ;;  %v1157_v21 = vpack.c.bf16 %v848_v14, %v846_v13  ;;  %v817_v28 = vadd.f32 %v1512_v30, %v760_v16 }
 0x1fc   : > { %v764_v25 = vadd.f32 %v763_v19, %v1503_v22  ;;  %v765_v26 = vpop.f32.mrb[27].mxu1  ;;  %v849_v34 = vmul.f32 %v816_v23, %v816_v23 }
 0x1fd   : > { %v766_v29 = vadd.f32 %v765_v26, %v1505_v24  ;;  %1158 = vmatprep.subr.bf16.mxu0 %v1157_v21  ;;  %v850_v38 = vmul.f32 %v817_v28, %v817_v28 }
 0x1fe   : > { %v818_v31 = vadd.f32 %v1509_v27, %v764_v25  ;;  %1160 = vmatpush1.bf16.xpose.msra.mxu0 %v1159_v17 }
 0x1ff   : > { %v819_v32 = vadd.f32 %v1512_v30, %v766_v29  ;;  %v769_v33 = vpop.f32.mrb[28].mxu1 }
 0x200   : > { %v851_v35 = vmul.f32 %v818_v31, %v818_v31  ;;  %v770_v36 = vadd.f32 %v769_v33, %v1503_v22  ;;  %v771_v37 = vpop.f32.mrb[29].mxu1 }
 0x201   : > { %v852_v39 = vmul.f32 %v819_v32, %v819_v32  ;;  %v772_v40 = vadd.f32 %v771_v37, %v1505_v24 }
 0x202   : > { %v1163_v41 = vpack.c.bf16 %v851_v35, %v849_v34  ;;  %v820_v44 = vadd.f32 %v1509_v27, %v770_v36 }
 0x203   : > { %v775_v42 = vpop.f32.mrb[30].mxu1  ;;  %v1161_v43 = vpack.c.bf16 %v852_v39, %v850_v38  ;;  %v821_v47 = vadd.f32 %v1512_v30, %v772_v40 }
 0x204   : > { %v776_v45 = vadd.f32 %v775_v42, %v1503_v22  ;;  %v777_v46 = vpop.f32.mrb[31].mxu1  ;;  %v853_v51 = vmul.f32 %v820_v44, %v820_v44  ;;  %v861_v22 = vrot.slane %v1491_v18, %v1494_v20 }
 0x205   : > { %v778_v48 = vadd.f32 %v777_v46, %v1505_v24  ;;  %1162 = vmatprep.subr.bf16.mxu0 %v1161_v43  ;;  %v854_v53 = vmul.f32 %v821_v47, %v821_v47  ;;  %v939_v24 = vand.u32 127, %v560_v15 }
 0x206   : > { %v822_v49 = vadd.f32 %v1509_v27, %v776_v45  ;;  %1164 = vmatpush1.bf16.xpose.msra.mxu0 %v1163_v41 }
 0x207   : > { %v823_v50 = vadd.f32 %v1512_v30, %v778_v48  ;;  %vm940_vm3 = vcmp.lt.s32.totalorder %v939_v24, 8 }
 0x208   : > { %v855_v52 = vmul.f32 %v822_v49, %v822_v49 }
 0x209   : > { %v856_v54 = vmul.f32 %v823_v50, %v823_v50 }
 0x20a   : > { %v1167_v55 = vpack.c.bf16 %v855_v52, %v853_v51 }
 0x20b   : > { %v1165_v56 = vpack.c.bf16 %v856_v54, %v854_v53 }
 0x20d   : > { %1166 = vmatprep.subr.bf16.mxu0 %v1165_v56 }
 0x20e   : > { %1168 = vmatpush1.bf16.xpose.msra.mxu0 %v1167_v55 }
 0x215   : > { %933 = vmatmul.mubr.f32.vlgmr.msra.gmra.mrb[16].mxu0 %v861_v22 }
 0x2e8   : > { %v934_v27 = vpop.f32.mrb[16].mxu0 }
 0x2e9   : > { %v941_v30 = vsel %vm940_vm3, %v934_v27, 1e+30  ;;  %v936_v57 = vpop.f32.mrb[17].mxu0 }
 0x2ea   : > { %v943_v58 = vsel %vm942_vm4, %v941_v30, inf }
 0x2eb   : > { %944 = vmin.xlane.f32.xlu0 %v943_v58 }
 0x378   : > { %v945_v59 = vpop.xlane.xlu0 %944 }
 0x379   : > { %v946_v60 = vsub.f32 %v941_v30, %v945_v59 }
 0x37b   : > { %v947_v61 = vmul.f32 -0.5, %v946_v60 }
 0x37d   : > { %948 = vst [vmem:[%s297_s22] sm:$0x1] %v947_v61 }
 0x37e   : > { %1222 = shalt.err (!%p1219_p4)
}
 0x37f   : > { %s1223_s15 = scalar_lea.hbm %s1584_s9, 16  ;;  %s1227_s28 = scalar_lea.hbm %s1633_s7, 32 }
 0x380   : > { %p1224_p7 = scmp.ne.s32.totalorder %s1584_s9, %s1223_s15  ;;  %p1228_p10 = scmp.lt.u32.totalorder %s1584_s9, %s1633_s7 }
 0x381   : > { %p1229_p11 = scmp.lt.u32.totalorder %s1227_s28, %s1223_s15  ;;  %p1231_p13 = scmp.lt.u32.totalorder %s1223_s15, %s1584_s9 }
 0x382   : > { %p1225_p8 = pnand %p1224_p7, %p1353_p5 }
 0x383   : > { %p1230_p12 = por %p1229_p11, %p1228_p10 }
 0x384   : > { %p1226_p9 = pneg %p1225_p8 }
 0x385   : > { %p1232_p0 = por %p1231_p13, %p1230_p12 }
 0x387   : > { %p1233_p1 = pnand %p1232_p0, %p1226_p9 }
 0x389   : > { %1236 = shalt.err (!%p1233_p1)
}
 0x38a   : > { %1169 = dma.vmem_to_hbm [thread:$0]  (%p1353_p5), %s1586_s23, 16, %s1584_s9, %s950_s13  }
 0x38b PF: > { %p1175_p2 = scmp.ge.s32.totalorder %s1271_s27, 2  ;;  %s974_s29 = sand.u32 1, %s1259_s24  }
 0x38c   : > { %s975_s8 = scalar_lea.sflag [#allocation3], %s974_s29 }
 0x38d   : > { %p1172_p3 = pnand %p1175_p2, %p1357_p6 }
 0x38f   : > { %1254 = dma.done.wait (!%p1172_p3), %s975_s8, 16  }
 0x390   : > { %1256 = vsyncadd (!%p1172_p3), %s975_s8, 4294967280  ;;  %p17_p4 = scmp.ge.s32.totalorder %s1340_s30, 4   ;;  %s1636_s24 = smov %s1263_s25 }
 0x391   : > { %s1637_s25 = smov %s1267_s26  ;;  %s1638_s26 = smov %s1351_s10 }
 0x392   : > { %s1639_s27 = smov %s1340_s30  ;;  %19 = sbr.rel (!%p17_p4) target bundleno = 3 (0x3), region = 89 }
 0x399   :  { %979 = vsyncpa [#allocation3], 1 }
 0x39a   :  { %981 = vsyncpa [#allocation3 + $0x1], 1 }

</bundles_post_ra>
